<compile_context>
chip_gen: v7x
topology: tpu7x:2x2x1
jax: 0.10.0
libtpu: 0.0.40
codegen_flags: <defaults>
</compile_context>

<pallas_src>
import functools

import jax
import jax.numpy as jnp
from jax.experimental import pallas as pl
from jax.experimental.pallas import tpu as pltpu

HL = 20
IN_FEATURES = 13
OUT_FEATURES = 1
DEFAULT_BLOCK_ROWS = 32768  # original batch rows per grid step (sweepable)


def _round_up(n, m):
    return ((n + m - 1) // m) * m


def _cdiv(a, b):
    return (a + b - 1) // b


def _pick_group_size():
    """Batch-packing factor g: packed K=13g and N=20g must fit one MXU tile."""
    kind = ""
    try:
        kind = jax.devices()[0].device_kind.lower()
    except Exception:
        pass
    # 256-wide MXU (v6e / v7x): g=12 -> K=156, N=240 (single pass).
    if ("v6" in kind) or ("v7" in kind) or ("7x" in kind):
        return 12
    # 128-wide MXU (v5e and older) or unknown: g=6 -> K=78, N=120.
    return 6


def mlp_kernel(x_ref, w1_ref, b1_ref, w2_ref, b2_ref, o_ref):
    # x_ref : [tbp, 13*g]   g original batch rows packed per row
    # w1_ref: [13*g, 20*g]  block-diagonal fc1 weight (resident)
    # b1_ref: [1, 20*g]     fc1 bias tiled g times
    # w2_ref: [20*g, g]     block-diagonal fc2 weight
    # b2_ref: [1, 1]        fc2 bias
    # o_ref : [tbp, g]      g outputs per packed row (lane-dense, contiguous)
    prec = jax.lax.Precision.DEFAULT
    h = jnp.dot(x_ref[...], w1_ref[...],
                preferred_element_type=jnp.float32, precision=prec)
    h = jnp.maximum(h + b1_ref[...], 0.0)                     # ReLU on the VPU
    y = jnp.dot(h, w2_ref[...],
                preferred_element_type=jnp.float32, precision=prec)
    o_ref[...] = (y + b2_ref[...]).astype(o_ref.dtype)
    # TODO(synk): fc2 could instead be a VPU multiply + 20-lane segmented
    # reduce (halves MXU pushes) at the cost of an in-kernel lane relayout.


@functools.partial(jax.jit, static_argnames=("block_rows",))
def mlp_forward(x, w1, b1, w2, b2, *, block_rows=DEFAULT_BLOCK_ROWS):
    """Forward pass. x: [B, 13]; w1: [13, HL]; b1: [1, HL]; w2: [HL, 1]; b2: [1, 1]."""
    B = x.shape[0]
    g = _pick_group_size()
    row_mult = 8 * g  # tile size multiple, counted in original batch rows

    # Balanced tiling: n_steps tiles of tb rows each.  Force >= 2 steps when B
    # allows, so ("parallel",) actually feeds both TensorCores on v7x.
    n_steps = max(1, _cdiv(B, block_rows))
    if n_steps == 1 and B >= 2 * row_mult:
        n_steps = 2
    tb = _round_up(_cdiv(B, n_steps), row_mult)   # original rows per grid step
    b_padded = n_steps * tb
    tbp = tb // g                                  # packed rows per grid step

    if b_padded != B:
        # Padding is bounded by n_steps * 8g rows (balanced tiles).
        # TODO(synk): a small separate tail call would avoid re-materializing x.
        x = jnp.pad(x, ((0, b_padded - B), (0, 0)))
    # Free reshape: consecutive rows are contiguous in HBM.
    x_packed = x.reshape(b_padded // g, IN_FEATURES * g)

    # Block-diagonal packed weights / tiled bias (tiny; constant-folded / fused
    # under jit -- hoist out of the step loop in a real training setup).
    eye = jnp.eye(g, dtype=w1.dtype)
    w1_blk = jnp.kron(eye, w1)                     # [13g, 20g]
    w2_blk = jnp.kron(eye, w2)                     # [20g, g]
    b1_tiled = jnp.tile(b1, (1, g))                # [1, 20g]

    out = pl.pallas_call(
        mlp_kernel,
        out_shape=jax.ShapeDtypeStruct((b_padded // g, g), jnp.float32),
        grid=(n_steps,),
        in_specs=[
            pl.BlockSpec((tbp, IN_FEATURES * g), lambda i: (i, 0)),    # x slab
            pl.BlockSpec((IN_FEATURES * g, HL * g), lambda i: (0, 0)),  # w1_blk
            pl.BlockSpec((1, HL * g), lambda i: (0, 0)),               # b1 tiled
            pl.BlockSpec((HL * g, g), lambda i: (0, 0)),               # w2_blk
            pl.BlockSpec((1, OUT_FEATURES), lambda i: (0, 0)),         # b2
        ],
        out_specs=pl.BlockSpec((tbp, g), lambda i: (i, 0)),
        compiler_params=pltpu.CompilerParams(
            dimension_semantics=("parallel",),         # megacore shard on v7x
            vmem_limit_bytes=48 * 1024 * 1024,         # safe on v7x's 64 MiB
        ),
        cost_estimate=pl.CostEstimate(
            flops=2 * b_padded * (IN_FEATURES * HL + HL * OUT_FEATURES),
            transcendentals=0,
            bytes_accessed=b_padded * (IN_FEATURES + OUT_FEATURES) * 4,
        ),
    )(x_packed, w1_blk, b1_tiled, w2_blk, b2)

    # Free reshape back to [B, 1] (packed output is row-major b*g + j).
    return out.reshape(b_padded, OUT_FEATURES)[:B]


def init_params(key):
    # Deterministic init mimicking PyTorch nn.Linear default:
    # uniform(-1/sqrt(fan_in), 1/sqrt(fan_in)) for weight and bias.
    k1, k2, k3, k4 = jax.random.split(key, 4)
    bound1 = 1.0 / jnp.sqrt(float(IN_FEATURES))
    bound2 = 1.0 / jnp.sqrt(float(HL))
    # Stored as [in, out] (transposed vs. PyTorch's [out, in]).
    w1 = jax.random.uniform(k1, (IN_FEATURES, HL), jnp.float32, -bound1, bound1)
    b1 = jax.random.uniform(k2, (1, HL), jnp.float32, -bound1, bound1)
    w2 = jax.random.uniform(k3, (HL, OUT_FEATURES), jnp.float32, -bound2, bound2)
    b2 = jax.random.uniform(k4, (1, OUT_FEATURES), jnp.float32, -bound2, bound2)
    return w1, b1, w2, b2


def _reference(x, w1, b1, w2, b2):
    # Full-precision reference; the kernel runs bf16-input MXU matmuls
    # (Precision.DEFAULT), so compare with a bf16-level tolerance.
    p = jax.lax.Precision.HIGHEST
    h = jnp.maximum(jnp.dot(x, w1, precision=p) + b1, 0.0)
    return jnp.dot(h, w2, precision=p) + b2


if __name__ == "__main__":
    key = jax.random.PRNGKey(0)
    kx, kx2, kp = jax.random.split(key, 3)
    w1, b1, w2, b2 = init_params(kp)

    # Small test (single grid step, ragged batch padded inside the wrapper).
    B = 8
    x = jax.random.normal(kx, (B, IN_FEATURES), dtype=jnp.float32)
    y = jax.block_until_ready(mlp_forward(x, w1, b1, w2, b2))
    y_ref = _reference(x, w1, b1, w2, b2)
    assert y.shape == (B, OUT_FEATURES)
    assert jnp.allclose(y, y_ref, atol=2e-2, rtol=2e-2)

    # Multi-step grid + ragged tail (grid of 4, last rows padded + sliced off).
    B2 = 200
    x2 = jax.random.normal(kx2, (B2, IN_FEATURES), dtype=jnp.float32)
    y2 = jax.block_until_ready(mlp_forward(x2, w1, b1, w2, b2, block_rows=64))
    y2_ref = _reference(x2, w1, b1, w2, b2)
    assert y2.shape == (B2, OUT_FEATURES)
    assert jnp.allclose(y2, y2_ref, atol=2e-2, rtol=2e-2)

    print("KERNEL_OK")
</pallas_src>

<mosaic_0001>
module attributes {stable_mosaic.version = 11 : i64} {
  func.func @mlp_kernel(%arg0: i32, %arg1: memref<8x78xf32, #tpu.memory_space<vmem>>, %arg2: memref<78x120xf32, #tpu.memory_space<vmem>>, %arg3: memref<1x120xf32, #tpu.memory_space<vmem>>, %arg4: memref<120x6xf32, #tpu.memory_space<vmem>>, %arg5: memref<1x1xf32, #tpu.memory_space<vmem>>, %arg6: memref<8x6xf32, #tpu.memory_space<vmem>>) attributes {dimension_semantics = [#tpu.dimension_semantics<parallel>], iteration_bounds = array<i64: 1>, scalar_prefetch = 0 : i64, scratch_operands = 0 : i64, tpu.core_type = #tpu.core_type<tc>, window_params = [{transform_indices = @transform_0, window_bounds = array<i64: 8, 78>}, {pipeline_mode = #tpu.pipeline_mode<synchronous>, transform_indices = @transform_1, window_bounds = array<i64: 78, 120>}, {pipeline_mode = #tpu.pipeline_mode<synchronous>, transform_indices = @transform_2, window_bounds = array<i64: 1, 120>}, {pipeline_mode = #tpu.pipeline_mode<synchronous>, transform_indices = @transform_3, window_bounds = array<i64: 120, 6>}, {pipeline_mode = #tpu.pipeline_mode<synchronous>, transform_indices = @transform_4, window_bounds = array<i64: 1, 1>}, {transform_indices = @transform_5, window_bounds = array<i64: 8, 6>}]} {
    %c0 = arith.constant 0 : index
    %c0_0 = arith.constant 0 : index
    %0 = vector.load %arg1[%c0, %c0_0] : memref<8x78xf32, #tpu.memory_space<vmem>>, vector<8x78xf32>
    %c0_1 = arith.constant 0 : index
    %c0_2 = arith.constant 0 : index
    %1 = vector.load %arg2[%c0_1, %c0_2] : memref<78x120xf32, #tpu.memory_space<vmem>>, vector<78x120xf32>
    %cst = arith.constant dense<0.000000e+00> : vector<8x120xf32>
    %2 = tpu.matmul %0, %1, %cst {dimension_numbers = #tpu.dot_dimension_numbers<[1], [0], [0], [1], [0, 0, 1, 1], [], []>} : vector<8x78xf32>, vector<78x120xf32>, vector<8x120xf32> -> vector<8x120xf32>
    %c0_3 = arith.constant 0 : index
    %c0_4 = arith.constant 0 : index
    %3 = vector.load %arg3[%c0_3, %c0_4] : memref<1x120xf32, #tpu.memory_space<vmem>>, vector<1x120xf32>
    %4 = vector.broadcast %3 : vector<1x120xf32> to vector<8x120xf32>
    %5 = arith.addf %2, %4 : vector<8x120xf32>
    %cst_5 = arith.constant 0.000000e+00 : f32
    %6 = vector.broadcast %cst_5 : f32 to vector<8x120xf32>
    %7 = arith.maximumf %5, %6 : vector<8x120xf32>
    %c0_6 = arith.constant 0 : index
    %c0_7 = arith.constant 0 : index
    %8 = vector.load %arg4[%c0_6, %c0_7] : memref<120x6xf32, #tpu.memory_space<vmem>>, vector<120x6xf32>
    %cst_8 = arith.constant dense<0.000000e+00> : vector<8x6xf32>
    %9 = tpu.matmul %7, %8, %cst_8 {dimension_numbers = #tpu.dot_dimension_numbers<[1], [0], [0], [1], [0, 0, 1, 1], [], []>} : vector<8x120xf32>, vector<120x6xf32>, vector<8x6xf32> -> vector<8x6xf32>
    %c0_9 = arith.constant 0 : index
    %c0_10 = arith.constant 0 : index
    %10 = vector.load %arg5[%c0_9, %c0_10] : memref<1x1xf32, #tpu.memory_space<vmem>>, vector<1x1xf32>
    %11 = vector.broadcast %10 : vector<1x1xf32> to vector<8x6xf32>
    %12 = arith.addf %9, %11 : vector<8x6xf32>
    %c0_11 = arith.constant 0 : index
    %c0_12 = arith.constant 0 : index
    %13 = vector.load %arg6[%c0_11, %c0_12] : memref<8x6xf32, #tpu.memory_space<vmem>>, vector<8x6xf32>
    tpu.vector_store %arg6[%c0_11, %c0_12], %12 {strides = array<i32>} : memref<8x6xf32, #tpu.memory_space<vmem>>, vector<8x6xf32>,
    return
  }
  func.func @transform_0(%arg0: i32) -> (i32, i32) {
    %c0_i32 = arith.constant 0 : i32
    %c0_i32_0 = arith.constant 0 : i32
    return %arg0, %c0_i32 : i32, i32
  }
  func.func @transform_1(%arg0: i32) -> (i32, i32) {
    %c0_i32 = arith.constant 0 : i32
    %c0_i32_0 = arith.constant 0 : i32
    %c0_i32_1 = arith.constant 0 : i32
    return %c0_i32, %c0_i32_0 : i32, i32
  }
  func.func @transform_2(%arg0: i32) -> (i32, i32) {
    %c0_i32 = arith.constant 0 : i32
    %c0_i32_0 = arith.constant 0 : i32
    %c0_i32_1 = arith.constant 0 : i32
    return %c0_i32, %c0_i32_0 : i32, i32
  }
  func.func @transform_3(%arg0: i32) -> (i32, i32) {
    %c0_i32 = arith.constant 0 : i32
    %c0_i32_0 = arith.constant 0 : i32
    %c0_i32_1 = arith.constant 0 : i32
    return %c0_i32, %c0_i32_0 : i32, i32
  }
  func.func @transform_4(%arg0: i32) -> (i32, i32) {
    %c0_i32 = arith.constant 0 : i32
    %c0_i32_0 = arith.constant 0 : i32
    %c0_i32_1 = arith.constant 0 : i32
    return %c0_i32, %c0_i32_0 : i32, i32
  }
  func.func @transform_5(%arg0: i32) -> (i32, i32) {
    %c0_i32 = arith.constant 0 : i32
    %c0_i32_0 = arith.constant 0 : i32
    return %arg0, %c0_i32 : i32, i32
  }
}

</mosaic_0001>

<bundles_post_ra>
// kernel: mlp_forward.1
= control target key start
LH: loop header
LB: loop body
LE: loop exit
PB: predicated region body
PF: predicated region fallthrough
CT: control target
= control target key end

     0   :  { %v355_v0 = vmov 0.0|0.0   ;;  %vm356_vm0 = vmmov 0   ;;  %v357_v6 = vmov 0.0   ;;  %vm44_vm1 = vcmask 1045504   ;;  %s492_s1 = inlined_call_operand.vmem [shape: f32[78,120], index: 1, kind: input, shape index: {}]   ;;  %s493_s3 = inlined_call_operand.vmem [shape: f32[120,6], index: 3, kind: input, shape index: {}]   ;;  %s494_s0 = inlined_call_operand.vmem [shape: f32[8,78], index: 0, kind: input, shape index: {}]   ;;  %s495_s4 = inlined_call_operand.<no memory space> [shape: f32[1,1], index: 4, kind: input, shape index: {}]   ;;  %s496_s2 = inlined_call_operand.vmem [shape: f32[1,120], index: 2, kind: input, shape index: {}]   ;;  %s497_s5 = inlined_call_operand.vmem [shape: f32[8,6], index: 5, kind: output, shape index: {}]  }
   0x1   :  { %312 = vmatprep.subr.bf16.mxu0 %v355_v0  ;;  %v23_v1 = vld [vmem:[%s492_s1] sm:$0xff]  ;;  %v24_v2 = vld [vmem:[%s492_s1 + $0x8] sm:$0xff]  ;;  %v25_v3 = vld [vmem:[%s492_s1 + $0x10] sm:$0xff]  ;;  %328 = vmatprep.subr.bf16.mxu1 %v355_v0  ;;  %vm358_vm2 = vmmov 1   ;;  %vm40_vm4 = vcmask 637952   ;;  %v359_v40 = vmov 0   ;;  %v10_v41 = vstv %s495_s4 }
   0x2   :  { %v313_v4 = vpack.c.bf16 %v24_v2, %v23_v1  ;;  %v26_v5 = vld [vmem:[%s492_s1 + $0x18] sm:$0xff]  ;;  %276 = vmatprep.mubr.msk.f32.mxu0 %vm356_vm0, %v357_v6  ;;  %309 = vmatprep.mubr.msk.f32.mxu1 %vm356_vm0, %v357_v6  ;;  %v27_v8 = vld [vmem:[%s492_s1 + $0x20] sm:$0xff]  ;;  %v28_v9 = vld [vmem:[%s492_s1 + $0x28] sm:$0xff]  ;;  %11 = vst [vmem:[#allocation2] sm:$0x1] %v10_v41  ;;  %vm144_vm5 = vcmask 982016  }
   0x3   :  { %v316_v7 = vpack.c.bf16 %v26_v5, %v25_v3  ;;  %v119_v10 = vld [vmem:[%s493_s3] sm:$0xff]  ;;  %v120_v11 = vld [vmem:[%s493_s3 + $0x8] sm:$0xff]  ;;  %v121_v12 = vld [vmem:[%s493_s3 + $0x10] sm:$0xff]  ;;  %v319_v15 = vpack.c.bf16 %v28_v9, %v27_v8  ;;  %354 = vset.pattern.permute.xlu0 %v359_v40  ;;  %vm218_vm6 = vcmask 48128  }
   0x4   :  { %314 = vmatpush3.bf16.msra.mxu0 %v313_v4  ;;  %v329_v13 = vpack.c.bf16 %v120_v11, %v119_v10  ;;  %v122_v14 = vld [vmem:[%s493_s3 + $0x18] sm:$0xff]  ;;  %v29_v16 = vld [vmem:[%s492_s1 + $0x30] sm:$0xff]  ;;  %v123_v19 = vld [vmem:[%s493_s3 + $0x20] sm:$0xff] }
   0x5   :  { %315 = vmatprep.subr.bf16.mxu0 %v355_v0  ;;  %v332_v17 = vpack.c.bf16 %v122_v14, %v121_v12  ;;  %v30_v18 = vld [vmem:[%s492_s1 + $0x38] sm:$0xff]  ;;  %v124_v20 = vld [vmem:[%s493_s3 + $0x28] sm:$0xff]  ;;  %v31_v22 = vld [vmem:[%s492_s1 + $0x40] sm:$0xff] }
   0x6   :  { %330 = vmatpush3.bf16.msra.mxu1 %v329_v13  ;;  %v322_v21 = vpack.c.bf16 %v30_v18, %v29_v16  ;;  %v335_v23 = vpack.c.bf16 %v124_v20, %v123_v19  ;;  %v32_v24 = vld [vmem:[%s492_s1 + $0x48] sm:$0x3f]  ;;  %v125_v25 = vld [vmem:[%s493_s3 + $0x30] sm:$0xff]  ;;  %v126_v26 = vld [vmem:[%s493_s3 + $0x38] sm:$0xff] }
   0x7   :  { %331 = vmatprep.subr.bf16.mxu1 %v355_v0  ;;  %v325_v27 = vpack.c.bf16 %v32_v24, %v31_v22  ;;  %v338_v28 = vpack.c.bf16 %v126_v26, %v125_v25  ;;  %vm326_vm3 = vmpackc.low %vm44_vm1, %vm358_vm2  ;;  %v127_v29 = vld [vmem:[%s493_s3 + $0x40] sm:$0xff]  ;;  %v128_v30 = vld [vmem:[%s493_s3 + $0x48] sm:$0xff] }
   0x8   :  { %317 = vmatpush3.bf16.msra.mxu0 %v316_v7  ;;  %v22_v31 = vld [vmem:[%s494_s0] sm:$0xff]  ;;  %v341_v32 = vpack.c.bf16 %v128_v30, %v127_v29  ;;  %v129_v33 = vld [vmem:[%s493_s3 + $0x50] sm:$0xff]  ;;  %v130_v34 = vld [vmem:[%s493_s3 + $0x58] sm:$0xff] }
   0x9   :  { %318 = vmatprep.subr.bf16.mxu0 %v355_v0  ;;  %v344_v35 = vpack.c.bf16 %v130_v34, %v129_v33  ;;  %v131_v36 = vld [vmem:[%s493_s3 + $0x60] sm:$0xff]  ;;  %v132_v37 = vld [vmem:[%s493_s3 + $0x68] sm:$0xff]  ;;  %v133_v39 = vld [vmem:[%s493_s3 + $0x70] sm:$0xff] }
   0xa   :  { %333 = vmatpush3.bf16.msra.mxu1 %v332_v17  ;;  %v347_v38 = vpack.c.bf16 %v132_v37, %v131_v36  ;;  %v227_v42 = vld [vmem:[#allocation2] ss:$0 sm:$0xff] }
   0xb   :  { %334 = vmatprep.subr.bf16.mxu1 %v355_v0  ;;  %141 = vperm.xlu0 %354, %v227_v42   ;;  %v224_v43 = vld [vmem:[%s496_s2] ss:$0 sm:$0xff] }
   0xc   :  { %320 = vmatpush3.bf16.msra.mxu0 %v319_v15 }
   0xd   :  { %321 = vmatprep.subr.bf16.mxu0 %v355_v0 }
   0xe   :  { %336 = vmatpush3.bf16.msra.mxu1 %v335_v23 }
   0xf   :  { %337 = vmatprep.subr.bf16.mxu1 %v355_v0 }
  0x10   :  { %323 = vmatpush3.bf16.msra.mxu0 %v322_v21 }
  0x11   :  { %324 = vmatprep.subr.bf16.mxu0 %v355_v0 }
  0x12   :  { %339 = vmatpush3.bf16.msra.mxu1 %v338_v28 }
  0x13   :  { %340 = vmatprep.subr.bf16.mxu1 %v355_v0 }
  0x14   :  { %327 = vmatpush3.bf16.msk.msra.mxu0 %vm326_vm3, %v325_v27 }
  0x16   :  { %342 = vmatpush3.bf16.msra.mxu1 %v341_v32 }
  0x17   :  { %277 = vmatmul.mubr.msk.f32.vlgmr.msra.gmra.mrb[0].mxu0 %vm40_vm4, %v22_v31  ;;  %343 = vmatprep.subr.bf16.mxu1 %v355_v0 }
  0x1a   :  { %345 = vmatpush3.bf16.msra.mxu1 %v344_v35 }
  0x1b   :  { %346 = vmatprep.subr.bf16.mxu1 %v355_v0 }
  0x1e   :  { %348 = vmatpush3.bf16.msra.mxu1 %v347_v38 }
  0x1f   :  { %307 = vmatprep.subr.mxu1 %v357_v6 }
  0x22   :  { %308 = vmatpush3.msra.mxu1 %v133_v39 }
  0x8a   :  { %v142_v48 = vpop.permute.xlu0 %141 }
  0xea   :  { %v114_v44 = vpop.f32.mrb[0].mxu0 }
  0xeb   :  { %v115_v45 = vadd.f32 %v224_v43, %v114_v44  ;;  %v278_v46 = vpop.f32.mrb[1].mxu0 }
  0xed   :  { %v118_v47 = vmax.f32 %v115_v45, 0.0 }
  0xef   :  { %310 = vmatmul.mubr.msk.f32.vlgmr.msra.gmra.mrb[0].mxu1 %vm144_vm5, %v118_v47 }
 0x1c2   :  { %v214_v49 = vpop.f32.mrb[0].mxu1 }
 0x1c3   :  { %v215_v50 = vadd.f32 %v214_v49, %v142_v48  ;;  %v311_v51 = vpop.f32.mrb[1].mxu1 }
 0x1c5   :  { %219 = vst.msk [vmem:[%s497_s5] sm:$0xff] %vm218_vm6, %v215_v50 }

</bundles_post_ra>
